<compile_context>
chip_gen: v7x
topology: tpu7x:2x2x1
jax: 0.10.0
libtpu: 0.0.40
codegen_flags: <defaults>
</compile_context>

<pallas_src>
import math

import jax
import jax.numpy as jnp
from jax.experimental import pallas as pl
from jax.experimental.pallas import tpu as pltpu

WIDTH = 32
D_IN = 3
D_OUT = 16

# mup MuReadout forward is: super().forward(output_mult * x / width_mult()).
# With default output_mult=1.0 and base width == width, width_mult() == 1.0.
# The scale is folded into W3 in prepare_params below, so a non-trivial value
# would be handled correctly as well.
# TODO(synk): wire a non-trivial width_mult if base shapes are ever set.
MUP_OUTPUT_SCALE = 1.0


def _round_up(n, m):
    return ((n + m - 1) // m) * m


def _mlp_kernel(xT_ref, w1T_ref, b1T_ref, w2T_ref, b2T_ref, w3T_ref, b3T_ref,
                oT_ref):
    xT = xT_ref[...]                                              # (3, TB)
    w1T = w1T_ref[...]                                            # (W, 3)

    # Layer 1: K=3 is far too small for an MXU pass -> 3 VPU outer-product
    # FMAs: (W,1) lane-broadcast * (1,TB) sublane-broadcast.
    h1 = (w1T[:, 0:1] * xT[0:1, :]
          + w1T[:, 1:2] * xT[1:2, :]
          + w1T[:, 2:3] * xT[2:3, :]
          + b1T_ref[...])                                         # (W, TB)
    h1 = jnp.maximum(h1, 0.0)

    # Layer 2: (W, W) @ (W, TB) on the MXU, f32 accumulation, TB output lanes.
    h2 = jnp.dot(w2T_ref[...], h1, preferred_element_type=jnp.float32)
    h2 = jnp.maximum(h2 + b2T_ref[...], 0.0)                      # (W, TB)

    # Readout (mup scale already folded into w3T): (D_OUT, W) @ (W, TB).
    out = jnp.dot(w3T_ref[...], h2, preferred_element_type=jnp.float32)
    oT_ref[...] = out + b3T_ref[...]                              # (D_OUT, TB)


def prepare_params(params):
    """Transpose params for the lane=batch kernel layout; fold mup scale."""
    w3 = params["w3"] * MUP_OUTPUT_SCALE                    # (W, D_OUT)
    return {
        "w1T": params["w1"].T,                              # (W, 3)
        "b1T": params["b1"].reshape(WIDTH, 1),              # (W, 1)
        "w2T": params["w2"].T,                              # (W, W)
        "b2T": params["b2"].reshape(WIDTH, 1),              # (W, 1)
        "w3T": w3.T,                                        # (D_OUT, W)
        "b3T": params["b3"].reshape(D_OUT, 1),              # (D_OUT, 1)
    }


def mymodel_forward(x, kparams, *, tb=512):
    """x: (B, 3) float32.  kparams: output of prepare_params().  Returns (B, 16)."""
    B = x.shape[0]

    # Batch tile on the lane axis: multiple of 128, capped at `tb`; pad B up
    # to a multiple of it so every grid step sees a full tile.
    tb_eff = min(_round_up(tb, 128), _round_up(B, 128))
    Bp = _round_up(B, tb_eff)

    xT = x.T                                                 # (3, B), tiny
    if Bp != B:
        xT = jnp.pad(xT, ((0, 0), (0, Bp - B)))
    grid = (Bp // tb_eff,)

    const = lambda i: (0, 0)                                 # resident weights
    in_specs = [
        pl.BlockSpec((D_IN, tb_eff), lambda i: (0, i)),      # x^T tile
        pl.BlockSpec((WIDTH, D_IN), const),                  # w1^T
        pl.BlockSpec((WIDTH, 1), const),                     # b1
        pl.BlockSpec((WIDTH, WIDTH), const),                 # w2^T
        pl.BlockSpec((WIDTH, 1), const),                     # b2
        pl.BlockSpec((D_OUT, WIDTH), const),                 # w3^T (scaled)
        pl.BlockSpec((D_OUT, 1), const),                     # b3
    ]
    out_spec = pl.BlockSpec((D_OUT, tb_eff), lambda i: (0, i))

    flops = 2 * Bp * (D_IN * WIDTH + WIDTH * WIDTH + WIDTH * D_OUT)
    bytes_accessed = 4 * (
        D_IN * Bp + D_OUT * Bp
        + WIDTH * D_IN + WIDTH + WIDTH * WIDTH + WIDTH
        + D_OUT * WIDTH + D_OUT
    )

    outT = pl.pallas_call(
        _mlp_kernel,
        out_shape=jax.ShapeDtypeStruct((D_OUT, Bp), jnp.float32),
        grid=grid,
        in_specs=in_specs,
        out_specs=out_spec,
        compiler_params=pltpu.CompilerParams(
            dimension_semantics=("parallel",)),
        cost_estimate=pl.CostEstimate(
            flops=flops, transcendentals=0, bytes_accessed=bytes_accessed),
    )(
        xT,
        kparams["w1T"], kparams["b1T"],
        kparams["w2T"], kparams["b2T"],
        kparams["w3T"], kparams["b3T"],
    )
    return outT[:, :B].T                                     # (B, D_OUT)


def init_params(key):
    """Deterministic init mimicking PyTorch nn.Linear (kaiming-uniform)."""
    ks = jax.random.split(key, 6)

    def linear(kw, kb, fan_in, fan_out):
        limit = 1.0 / math.sqrt(fan_in)            # kaiming_uniform(a=sqrt(5))
        w = jax.random.uniform(kw, (fan_in, fan_out), jnp.float32,
                               -limit, limit)       # (in, out) layout
        b = jax.random.uniform(kb, (1, fan_out), jnp.float32, -limit, limit)
        return w, b

    w1, b1 = linear(ks[0], ks[1], D_IN, WIDTH)
    w2, b2 = linear(ks[2], ks[3], WIDTH, WIDTH)
    w3, b3 = linear(ks[4], ks[5], WIDTH, D_OUT)
    return {"w1": w1, "b1": b1, "w2": w2, "b2": b2, "w3": w3, "b3": b3}


def reference_forward(x, p):
    h1 = jnp.maximum(x @ p["w1"] + p["b1"], 0.0)
    h2 = jnp.maximum(h1 @ p["w2"] + p["b2"], 0.0)
    return (h2 * MUP_OUTPUT_SCALE) @ p["w3"] + p["b3"]


if __name__ == "__main__":
    key = jax.random.PRNGKey(0)
    k_x, k_p = jax.random.split(key)
    params = init_params(k_p)
    kparams = prepare_params(params)

    # Small batch (single tile; batch padded 16 -> 128 lanes inside wrapper).
    B_small = 16
    x_small = jax.random.normal(k_x, (B_small, D_IN), jnp.float32)
    out_small = jax.block_until_ready(mymodel_forward(x_small, kparams))
    ref_small = reference_forward(x_small, params)
    assert out_small.shape == (B_small, D_OUT)
    assert jnp.allclose(out_small, ref_small, atol=1e-5, rtol=1e-5)

    # Larger, non-tile-multiple batch: exercises multi-step grid + padding.
    B_big = 1000
    x_big = jax.random.normal(k_x, (B_big, D_IN), jnp.float32)
    out_big = jax.block_until_ready(mymodel_forward(x_big, kparams, tb=256))
    ref_big = reference_forward(x_big, params)
    assert out_big.shape == (B_big, D_OUT)
    assert jnp.allclose(out_big, ref_big, atol=1e-5, rtol=1e-5)

    print("KERNEL_OK")
</pallas_src>

<mosaic_0001>
module attributes {stable_mosaic.version = 11 : i64} {
  func.func @_mlp_kernel(%arg0: i32, %arg1: memref<3x128xf32, #tpu.memory_space<vmem>>, %arg2: memref<32x3xf32, #tpu.memory_space<vmem>>, %arg3: memref<32x1xf32, #tpu.memory_space<vmem>>, %arg4: memref<32x32xf32, #tpu.memory_space<vmem>>, %arg5: memref<32x1xf32, #tpu.memory_space<vmem>>, %arg6: memref<16x32xf32, #tpu.memory_space<vmem>>, %arg7: memref<16x1xf32, #tpu.memory_space<vmem>>, %arg8: memref<16x128xf32, #tpu.memory_space<vmem>>) attributes {dimension_semantics = [#tpu.dimension_semantics<parallel>], iteration_bounds = array<i64: 1>, scalar_prefetch = 0 : i64, scratch_operands = 0 : i64, tpu.core_type = #tpu.core_type<tc>, window_params = [{transform_indices = @transform_0, window_bounds = array<i64: 3, 128>}, {pipeline_mode = #tpu.pipeline_mode<synchronous>, transform_indices = @transform_1, window_bounds = array<i64: 32, 3>}, {pipeline_mode = #tpu.pipeline_mode<synchronous>, transform_indices = @transform_2, window_bounds = array<i64: 32, 1>}, {pipeline_mode = #tpu.pipeline_mode<synchronous>, transform_indices = @transform_3, window_bounds = array<i64: 32, 32>}, {pipeline_mode = #tpu.pipeline_mode<synchronous>, transform_indices = @transform_4, window_bounds = array<i64: 32, 1>}, {pipeline_mode = #tpu.pipeline_mode<synchronous>, transform_indices = @transform_5, window_bounds = array<i64: 16, 32>}, {pipeline_mode = #tpu.pipeline_mode<synchronous>, transform_indices = @transform_6, window_bounds = array<i64: 16, 1>}, {transform_indices = @transform_7, window_bounds = array<i64: 16, 128>}]} {
    %c0 = arith.constant 0 : index
    %c0_0 = arith.constant 0 : index
    %0 = vector.load %arg1[%c0, %c0_0] : memref<3x128xf32, #tpu.memory_space<vmem>>, vector<3x128xf32>
    %c0_1 = arith.constant 0 : index
    %c0_2 = arith.constant 0 : index
    %1 = vector.load %arg2[%c0_1, %c0_2] : memref<32x3xf32, #tpu.memory_space<vmem>>, vector<32x3xf32>
    %2 = vector.extract_strided_slice %1 {offsets = [0, 0], sizes = [32, 1], strides = [1, 1]} : vector<32x3xf32> to vector<32x1xf32>
    %3 = vector.extract_strided_slice %0 {offsets = [0, 0], sizes = [1, 128], strides = [1, 1]} : vector<3x128xf32> to vector<1x128xf32>
    %4 = vector.broadcast %2 : vector<32x1xf32> to vector<32x128xf32>
    %5 = vector.broadcast %3 : vector<1x128xf32> to vector<32x128xf32>
    %6 = arith.mulf %4, %5 : vector<32x128xf32>
    %7 = vector.extract_strided_slice %1 {offsets = [0, 1], sizes = [32, 1], strides = [1, 1]} : vector<32x3xf32> to vector<32x1xf32>
    %8 = vector.extract_strided_slice %0 {offsets = [1, 0], sizes = [1, 128], strides = [1, 1]} : vector<3x128xf32> to vector<1x128xf32>
    %9 = vector.broadcast %7 : vector<32x1xf32> to vector<32x128xf32>
    %10 = vector.broadcast %8 : vector<1x128xf32> to vector<32x128xf32>
    %11 = arith.mulf %9, %10 : vector<32x128xf32>
    %12 = arith.addf %6, %11 : vector<32x128xf32>
    %13 = vector.extract_strided_slice %1 {offsets = [0, 2], sizes = [32, 1], strides = [1, 1]} : vector<32x3xf32> to vector<32x1xf32>
    %14 = vector.extract_strided_slice %0 {offsets = [2, 0], sizes = [1, 128], strides = [1, 1]} : vector<3x128xf32> to vector<1x128xf32>
    %15 = vector.broadcast %13 : vector<32x1xf32> to vector<32x128xf32>
    %16 = vector.broadcast %14 : vector<1x128xf32> to vector<32x128xf32>
    %17 = arith.mulf %15, %16 : vector<32x128xf32>
    %18 = arith.addf %12, %17 : vector<32x128xf32>
    %c0_3 = arith.constant 0 : index
    %c0_4 = arith.constant 0 : index
    %19 = vector.load %arg3[%c0_3, %c0_4] : memref<32x1xf32, #tpu.memory_space<vmem>>, vector<32x1xf32>
    %20 = vector.broadcast %19 : vector<32x1xf32> to vector<32x128xf32>
    %21 = arith.addf %18, %20 : vector<32x128xf32>
    %cst = arith.constant 0.000000e+00 : f32
    %22 = vector.broadcast %cst : f32 to vector<32x128xf32>
    %23 = arith.maximumf %21, %22 : vector<32x128xf32>
    %c0_5 = arith.constant 0 : index
    %c0_6 = arith.constant 0 : index
    %24 = vector.load %arg4[%c0_5, %c0_6] : memref<32x32xf32, #tpu.memory_space<vmem>>, vector<32x32xf32>
    %cst_7 = arith.constant dense<0.000000e+00> : vector<32x128xf32>
    %25 = tpu.matmul %24, %23, %cst_7 {dimension_numbers = #tpu.dot_dimension_numbers<[1], [0], [0], [1], [0, 0, 1, 1], [], []>} : vector<32x32xf32>, vector<32x128xf32>, vector<32x128xf32> -> vector<32x128xf32>
    %c0_8 = arith.constant 0 : index
    %c0_9 = arith.constant 0 : index
    %26 = vector.load %arg5[%c0_8, %c0_9] : memref<32x1xf32, #tpu.memory_space<vmem>>, vector<32x1xf32>
    %27 = vector.broadcast %26 : vector<32x1xf32> to vector<32x128xf32>
    %28 = arith.addf %25, %27 : vector<32x128xf32>
    %cst_10 = arith.constant 0.000000e+00 : f32
    %29 = vector.broadcast %cst_10 : f32 to vector<32x128xf32>
    %30 = arith.maximumf %28, %29 : vector<32x128xf32>
    %c0_11 = arith.constant 0 : index
    %c0_12 = arith.constant 0 : index
    %31 = vector.load %arg6[%c0_11, %c0_12] : memref<16x32xf32, #tpu.memory_space<vmem>>, vector<16x32xf32>
    %cst_13 = arith.constant dense<0.000000e+00> : vector<16x128xf32>
    %32 = tpu.matmul %31, %30, %cst_13 {dimension_numbers = #tpu.dot_dimension_numbers<[1], [0], [0], [1], [0, 0, 1, 1], [], []>} : vector<16x32xf32>, vector<32x128xf32>, vector<16x128xf32> -> vector<16x128xf32>
    %c0_14 = arith.constant 0 : index
    %c0_15 = arith.constant 0 : index
    %33 = vector.load %arg7[%c0_14, %c0_15] : memref<16x1xf32, #tpu.memory_space<vmem>>, vector<16x1xf32>
    %34 = vector.broadcast %33 : vector<16x1xf32> to vector<16x128xf32>
    %35 = arith.addf %32, %34 : vector<16x128xf32>
    %c0_16 = arith.constant 0 : index
    %c0_17 = arith.constant 0 : index
    %36 = vector.load %arg8[%c0_16, %c0_17] : memref<16x128xf32, #tpu.memory_space<vmem>>, vector<16x128xf32>
    tpu.vector_store %arg8[%c0_16, %c0_17], %35 {strides = array<i32>} : memref<16x128xf32, #tpu.memory_space<vmem>>, vector<16x128xf32>,
    return
  }
  func.func @transform_0(%arg0: i32) -> (i32, i32) {
    %c0_i32 = arith.constant 0 : i32
    %c0_i32_0 = arith.constant 0 : i32
    return %c0_i32, %arg0 : i32, i32
  }
  func.func @transform_1(%arg0: i32) -> (i32, i32) {
    %c0_i32 = arith.constant 0 : i32
    %c0_i32_0 = arith.constant 0 : i32
    %c0_i32_1 = arith.constant 0 : i32
    return %c0_i32, %c0_i32_0 : i32, i32
  }
  func.func @transform_2(%arg0: i32) -> (i32, i32) {
    %c0_i32 = arith.constant 0 : i32
    %c0_i32_0 = arith.constant 0 : i32
    %c0_i32_1 = arith.constant 0 : i32
    return %c0_i32, %c0_i32_0 : i32, i32
  }
  func.func @transform_3(%arg0: i32) -> (i32, i32) {
    %c0_i32 = arith.constant 0 : i32
    %c0_i32_0 = arith.constant 0 : i32
    %c0_i32_1 = arith.constant 0 : i32
    return %c0_i32, %c0_i32_0 : i32, i32
  }
  func.func @transform_4(%arg0: i32) -> (i32, i32) {
    %c0_i32 = arith.constant 0 : i32
    %c0_i32_0 = arith.constant 0 : i32
    %c0_i32_1 = arith.constant 0 : i32
    return %c0_i32, %c0_i32_0 : i32, i32
  }
  func.func @transform_5(%arg0: i32) -> (i32, i32) {
    %c0_i32 = arith.constant 0 : i32
    %c0_i32_0 = arith.constant 0 : i32
    %c0_i32_1 = arith.constant 0 : i32
    return %c0_i32, %c0_i32_0 : i32, i32
  }
  func.func @transform_6(%arg0: i32) -> (i32, i32) {
    %c0_i32 = arith.constant 0 : i32
    %c0_i32_0 = arith.constant 0 : i32
    %c0_i32_1 = arith.constant 0 : i32
    return %c0_i32, %c0_i32_0 : i32, i32
  }
  func.func @transform_7(%arg0: i32) -> (i32, i32) {
    %c0_i32 = arith.constant 0 : i32
    %c0_i32_0 = arith.constant 0 : i32
    return %c0_i32, %arg0 : i32, i32
  }
}

</mosaic_0001>

<bundles_post_ra>
// kernel: tpu_custom_call.1
= control target key start
LH: loop header
LB: loop body
LE: loop exit
PB: predicated region body
PF: predicated region fallthrough
CT: control target
= control target key end

     0   :  { %v490_v1 = vmov 2   ;;  %v491_v2 = vmov 1   ;;  %s617_s0 = inlined_call_operand.vmem [shape: f32[3,128], index: 0, kind: input, shape index: {}]   ;;  %s618_s1 = inlined_call_operand.vmem [shape: f32[32,3], index: 1, kind: input, shape index: {}]   ;;  %s619_s2 = inlined_call_operand.vmem [shape: f32[32,1], index: 2, kind: input, shape index: {}]   ;;  %s620_s3 = inlined_call_operand.vmem [shape: f32[32,32], index: 3, kind: input, shape index: {}]   ;;  %s621_s4 = inlined_call_operand.vmem [shape: f32[32,1], index: 4, kind: input, shape index: {}]   ;;  %s622_s5 = inlined_call_operand.vmem [shape: f32[16,32], index: 5, kind: input, shape index: {}]   ;;  %s623_s6 = inlined_call_operand.vmem [shape: f32[16,1], index: 6, kind: input, shape index: {}]   ;;  %s624_s7 = inlined_call_operand.hbm [shape: f32[16,128], index: 7, kind: output, shape index: {}]  }
   0x1   :  { %v28_v0 = vld [vmem:[%s618_s1] sm:$0xff]  ;;  %459 = vset.pattern.permute.xlu0 %v490_v1  ;;  %458 = vset.pattern.permute.xlu1 %v491_v2  ;;  %v30_v3 = vld [vmem:[%s618_s1 + $0x10] sm:$0xff]  ;;  %v29_v4 = vld [vmem:[%s618_s1 + $0x8] sm:$0xff] }
   0x2   :  { %89 = vperm.xlu0 %459, %v28_v0   ;;  %61 = vperm.xlu1 %458, %v28_v0  }
   0x3   :  { %12 = vsyncpa [#allocation3], 0  ;;  %v492_v5 = vmov 0   ;;  %v31_v6 = vld [vmem:[%s618_s1 + $0x18] sm:$0xff]  ;;  %v117_v7 = vld [vmem:[%s619_s2 + $0x8] sm:$0xff]  ;;  %vm176_vm0 = vcmask 261120   ;;  %v52_v23 = vlaneseq }
   0x4   :  { %v152_v8 = vld [vmem:[%s621_s4] sm:$0xff]  ;;  %v154_v9 = vld [vmem:[%s621_s4 + $0x10] sm:$0xff]  ;;  %v119_v13 = vld [vmem:[%s619_s2 + $0x18] sm:$0xff]  ;;  %s493_s14 = smov [#allocation2]  }
   0x5   :  { %v280_v10 = vld [vmem:[%s623_s6] sm:$0xff]  ;;  %v118_v12 = vld [vmem:[%s619_s2 + $0x10] sm:$0xff]  ;;  %v153_v14 = vld [vmem:[%s621_s4 + $0x8] sm:$0xff]  ;;  %v53_v25 = vshrl.u32 %v52_v23, 7  ;;  %s380_s1 = sshll.u32 %s493_s14, 4  ;;  %s381_s1 = int_to_ptr.vmem [resolvable:$true] %s380_s1 }
   0x6   :  { %97 = vperm.xlu0 %459, %v30_v3   ;;  %65 = vperm.xlu1 %458, %v29_v4   ;;  %v116_v11 = vld [vmem:[%s619_s2] sm:$0xff]  ;;  %v155_v15 = vld [vmem:[%s621_s4 + $0x18] sm:$0xff]  ;;  %v281_v17 = vld [vmem:[%s623_s6 + $0x8] sm:$0xff]  ;;  %s466_s15 = scalar_lea.vmem %s381_s1, 256  ;;  %p471_p1 = scmp.lt.s32.totalorder %s381_s1, %s381_s1 }
   0x7   :  { %v148_v16 = vld [vmem:[%s620_s3] sm:$0xff]  ;;  %v54_v27 = vsub.s32 0, %v53_v25  ;;  %v78_v29 = vsub.s32 1, %v53_v25  ;;  %v106_v32 = vsub.s32 2, %v53_v25  ;;  %p467_p0 = scmp.ne.s32.totalorder %s381_s1, %s466_s15  ;;  %p472_p2 = scmp.lt.s32.totalorder %s466_s15, %s466_s15 }
   0x8   :  { %419 = vmatprep.mubr.msk.f32.mxu0 %vm176_vm0, %v148_v16  ;;  %v27_v30 = vld [vmem:[%s617_s0] sm:$0x7] }
   0x9   :  { %v55_v33 = vrot.slane %v27_v30, %v54_v27  ;;  %v79_v34 = vrot.slane %v27_v30, %v78_v29  ;;  %v107_v38 = vrot.slane %v27_v30, %v106_v32  ;;  %p473_p3 = por %p472_p2, %p471_p1 }
   0xa   :  { %463 = vset.pattern.permute.xlu0 %v492_v5  ;;  %460 = vset.pattern.permute.xlu1 %v490_v1 }
   0xb   :  { %34 = vperm.xlu0 %463, %v28_v0   ;;  %93 = vperm.xlu1 %460, %v29_v4   ;;  %p474_p4 = pnand %p473_p3, %p467_p0 }
   0xf   :  { %39 = vperm.xlu0 %463, %v29_v4   ;;  %461 = vset.pattern.permute.xlu1 %v492_v5 }
  0x10   :  { %44 = vperm.xlu1 %461, %v30_v3  }
  0x13   :  { %49 = vperm.xlu0 %463, %v31_v6  }
  0x14   :  { %462 = vset.pattern.permute.xlu1 %v491_v2 }
  0x15   :  { %69 = vperm.xlu1 %462, %v30_v3  }
  0x17   :  { %127 = vperm.xlu0 %463, %v117_v7  }
  0x19   :  { %73 = vperm.xlu1 %462, %v31_v6  }
  0x1b   :  { %158 = vperm.xlu0 %463, %v152_v8  }
  0x1d   :  { %464 = vset.pattern.permute.xlu1 %v490_v1 }
  0x1e   :  { %101 = vperm.xlu1 %464, %v31_v6  }
  0x1f   :  { %168 = vperm.xlu0 %463, %v154_v9   ;;  %v149_v9 = vld [vmem:[%s620_s3 + $0x8] sm:$0xff] }
  0x22   :  { %465 = vset.pattern.permute.xlu1 %v492_v5 }
  0x23   :  { %284 = vperm.xlu0 %463, %v280_v10   ;;  %122 = vperm.xlu1 %465, %v116_v11   ;;  %v150_v10 = vld [vmem:[%s620_s3 + $0x10] sm:$0xff]  ;;  %v151_v11 = vld [vmem:[%s620_s3 + $0x18] sm:$0xff] }
  0x27   :  { %132 = vperm.xlu1 %465, %v118_v12   ;;  %v278_v12 = vld [vmem:[%s622_s5] sm:$0xff] }
  0x28   :  { %433 = vmatprep.mubr.msk.f32.mxu1 %vm176_vm0, %v278_v12 }
  0x2b   :  { %137 = vperm.xlu1 %465, %v119_v13  }
  0x2f   :  { %163 = vperm.xlu1 %465, %v153_v14  }
  0x33   :  { %173 = vperm.xlu1 %465, %v155_v15  }
  0x37   :  { %289 = vperm.xlu1 %465, %v281_v17  }
  0x81   :  { %v62_v18 = vpop.permute.xlu1 %61  ;;  %v90_v19 = vpop.permute.xlu0 %89 }
  0x82   :  { %v80_v41 = vmul.f32 %v79_v34, %v62_v18  ;;  %v108_v43 = vmul.f32 %v107_v38, %v90_v19 }
  0x85   :  { %v66_v20 = vpop.permute.xlu1 %65  ;;  %v98_v21 = vpop.permute.xlu0 %97 }
  0x86   :  { %v81_v39 = vmul.f32 %v79_v34, %v66_v20  ;;  %v110_v58 = vmul.f32 %v107_v38, %v98_v21 }
  0x8a   :  { %v94_v22 = vpop.permute.xlu1 %93  ;;  %v35_v24 = vpop.permute.xlu0 %34 }
  0x8b   :  { %v56_v40 = vmul.f32 %v55_v33, %v35_v24  ;;  %v109_v45 = vmul.f32 %v107_v38, %v94_v22 }
  0x8d   :  { %v84_v44 = vadd.f32 %v80_v41, %v56_v40 }
  0x8e   :  { %v40_v28 = vpop.permute.xlu0 %39 }
  0x8f   :  { %v45_v26 = vpop.permute.xlu1 %44  ;;  %v57_v35 = vmul.f32 %v55_v33, %v40_v28  ;;  %v112_v52 = vadd.f32 %v108_v43, %v84_v44 }
  0x90   :  { %v58_v50 = vmul.f32 %v55_v33, %v45_v26 }
  0x91   :  { %v85_v42 = vadd.f32 %v81_v39, %v57_v35 }
  0x92   :  { %v50_v36 = vpop.permute.xlu0 %49 }
  0x93   :  { %v113_v49 = vadd.f32 %v109_v45, %v85_v42  ;;  %v59_v54 = vmul.f32 %v55_v33, %v50_v36 }
  0x94   :  { %v70_v31 = vpop.permute.xlu1 %69 }
  0x95   :  { %v82_v48 = vmul.f32 %v79_v34, %v70_v31  ;;  %v279_v31 = vld [vmem:[%s622_s5 + $0x8] sm:$0xff] }
  0x96   :  { %v128_v47 = vpop.permute.xlu0 %127 }
  0x97   :  { %v141_v51 = vadd.f32 %v128_v47, %v113_v49  ;;  %v86_v55 = vadd.f32 %v82_v48, %v58_v50 }
  0x98   :  { %v74_v37 = vpop.permute.xlu1 %73 }
  0x99   :  { %v83_v56 = vmul.f32 %v79_v34, %v74_v37  ;;  %v145_v59 = vmax.f32 %v141_v51, 0.0  ;;  %v114_v0 = vadd.f32 %v110_v58, %v86_v55 }
  0x9a   :  { %v159_v14 = vpop.permute.xlu0 %158 }
  0x9b   :  { %v87_v63 = vadd.f32 %v83_v56, %v59_v54 }
  0x9d   :  { %v102_v46 = vpop.permute.xlu1 %101 }
  0x9e   :  { %v111_v60 = vmul.f32 %v107_v38, %v102_v46  ;;  %v169_v23 = vpop.permute.xlu0 %168 }
  0xa0   :  { %v115_v3 = vadd.f32 %v111_v60, %v87_v63 }
  0xa2   :  { %v123_v53 = vpop.permute.xlu1 %122  ;;  %v285_v34 = vpop.permute.xlu0 %284 }
  0xa3   :  { %v140_v57 = vadd.f32 %v123_v53, %v112_v52 }
  0xa5   :  { %v144_v61 = vmax.f32 %v140_v57, 0.0 }
  0xa6   :  { %v133_v62 = vpop.permute.xlu1 %132 }
  0xa7   :  { %v436_v1 = vpack.c.bf16 %v145_v59, %v144_v61  ;;  %v142_v2 = vadd.f32 %v133_v62, %v114_v0 }
  0xa9   :  { %437 = vmatprep.subr.bf16.mxu0 %v436_v1  ;;  %v146_v6 = vmax.f32 %v142_v2, 0.0 }
  0xaa   :  { %v138_v4 = vpop.permute.xlu1 %137  ;;  %439 = vmatpush3.bf16.msra.mxu0 %v436_v1 }
  0xab   :  { %v143_v5 = vadd.f32 %v138_v4, %v115_v3 }
  0xad   :  { %v147_v7 = vmax.f32 %v143_v5, 0.0 }
  0xae   :  { %v164_v13 = vpop.permute.xlu1 %163 }
  0xaf   :  { %v440_v8 = vpack.c.bf16 %v147_v7, %v146_v6 }
  0xb1   :  { %441 = vmatprep.subr.bf16.mxu0 %v440_v8 }
  0xb2   :  { %443 = vmatpush3.bf16.msra.mxu0 %v440_v8  ;;  %v174_v20 = vpop.permute.xlu1 %173 }
  0xb5   :  { %420 = vmatmul.mubr.msk.f32.vlgmr.msra.gmra.mrb[0].mxu0 %vm176_vm0, %v149_v9 }
  0xb6   :  { %422 = vmatprep.mubr.msk.f32.mxu0 %vm176_vm0, %v150_v10  ;;  %v290_v32 = vpop.permute.xlu1 %289 }
  0xb9   :  { %423 = vmatmul.mubr.msk.f32.gmra.mrb[2].mxu0 %vm176_vm0, %v151_v11 }
 0x188   :  { %v421_v15 = vpop.f32.mrb[0].mxu0 }
 0x189   :  { %v261_v16 = vadd.f32 %v421_v15, %v164_v13  ;;  %v255_v17 = vpop.f32.mrb[1].mxu0 }
 0x18a   :  { %v256_v18 = vadd.f32 %v255_v17, %v159_v14 }
 0x18b   :  { %v275_v19 = vmax.f32 %v261_v16, 0.0 }
 0x18c   :  { %v274_v21 = vmax.f32 %v256_v18, 0.0  ;;  %v424_v22 = vpop.f32.mrb[2].mxu0 }
 0x18d   :  { %v271_v24 = vadd.f32 %v424_v22, %v174_v20  ;;  %v265_v25 = vpop.f32.mrb[3].mxu0 }
 0x18e   :  { %v266_v26 = vadd.f32 %v265_v25, %v169_v23  ;;  %v444_v27 = vpack.c.bf16 %v275_v19, %v274_v21 }
 0x18f   :  { %v277_v28 = vmax.f32 %v271_v24, 0.0 }
 0x190   :  { %v276_v29 = vmax.f32 %v266_v26, 0.0  ;;  %445 = vmatprep.subr.bf16.mxu1 %v444_v27 }
 0x191   :  { %447 = vmatpush3.bf16.msra.mxu1 %v444_v27 }
 0x192   :  { %v448_v30 = vpack.c.bf16 %v277_v28, %v276_v29 }
 0x194   :  { %449 = vmatprep.subr.bf16.mxu1 %v448_v30 }
 0x195   :  { %451 = vmatpush3.bf16.msra.mxu1 %v448_v30 }
 0x198   :  { %434 = vmatmul.mubr.msk.f32.vlgmr.msra.gmra.mrb[0].mxu1 %vm176_vm0, %v279_v31 }
 0x26b   :  { %v435_v33 = vpop.f32.mrb[0].mxu1 }
 0x26c   :  { %v370_v35 = vadd.f32 %v435_v33, %v290_v32  ;;  %v364_v36 = vpop.f32.mrb[1].mxu1 }
 0x26d   :  { %v365_v37 = vadd.f32 %v364_v36, %v285_v34 }
 0x26e   :  { %374 = vst [vmem:[#allocation2 + $0x8] sm:$0xff] %v370_v35 }
 0x26f   :  { %373 = vst [vmem:[#allocation2] sm:$0xff] %v365_v37 }
 0x270   :  { %477 = shalt.err (!%p474_p4)
}
 0x271   :  { %s478_s17 = scalar_lea.hbm %s624_s7, 256 }
 0x272   :  { %p479_p5 = scmp.ne.s32.totalorder %s624_s7, %s478_s17  ;;  %p482_p6 = scmp.lt.u32.totalorder %s478_s17, %s624_s7 }
 0x274   :  { %p484_p7 = pnand %p482_p6, %p479_p5 }
 0x276   :  { %487 = shalt.err (!%p484_p7)
}
 0x277   :  { %s494_s22 = smov 128   ;;  %s495_s23 = smov 8  }
 0x278   :  { %386 = dma.vmem_to_hbm [thread:$0]  %s381_s1, 256, %s624_s7, [#allocation3], %s494_s22, %s494_s22, %s495_s23  }
 0x279   :  { %488 = dma.done.wait [#allocation3], 256  }
 0x27a   :  { %489 = vsyncadd [#allocation3], 4294967040 }
 0x27b   :  { %390 = vsyncpa [#allocation3], 1 }

</bundles_post_ra>
